<compile_context>
chip_gen: v5e
topology: v5e:2x2
jax: 0.10.0
libtpu: 0.0.40
codegen_flags: <defaults>
</compile_context>

<pallas_src>
import jax
import jax.numpy as jnp
from jax.experimental import pallas as pl
from jax.experimental.pallas import tpu as pltpu

LANES = 128  # lane width of a TPU vreg


def _mixexp_phi_kernel(w_ref, lam_ref, t_ref, out_ref):
    # w_ref, lam_ref : SMEM [1, K] f32 mixture weights / rates (scalars)
    # t_ref, out_ref : VMEM [TB, 128] lane-dense tile (native I/O dtype)
    t = t_ref[...].astype(jnp.float32)      # upcast in-register (no HBM convert pass)
    K = w_ref.shape[1]
    # K is tiny & static -> Python-unrolled; one EUP exp + one VPU fma per
    # component per element.  Scalar broadcasts happen once per tile.
    acc = w_ref[0, 0] * jnp.exp(-lam_ref[0, 0] * t)
    for k in range(1, K):
        acc = acc + w_ref[0, k] * jnp.exp(-lam_ref[0, k] * t)
    out_ref[...] = acc.astype(out_ref.dtype)


def _round_up(x, m):
    return ((x + m - 1) // m) * m


def mixexp_phi(t, mix, slope, *, row_tile=4096):
    """Pallas implementation of MixExpPhi.forward(t)."""
    orig_shape = t.shape
    dtype = t.dtype
    if dtype not in (jnp.float32, jnp.bfloat16, jnp.float16):
        t = t.astype(jnp.float32)
        dtype = jnp.dtype(jnp.float32)
    flat = jnp.ravel(t)
    n = flat.shape[0]
    K = mix.shape[-1]

    # Parameter math identical to the torch module's forward (tiny -> plain XLA).
    w = jax.nn.softmax(mix.astype(jnp.float32)).reshape(1, K)
    lam = jnp.exp(slope.astype(jnp.float32)).reshape(1, K)

    # Lane-dense layout: flattened queries fill the 128-lane axis; rows tiled
    # in ~2 MiB blocks (row_tile x 128 x 4B) so per-grid-step overhead is
    # negligible while VMEM double-buffering fits every TPU generation.
    rows = max(pl.cdiv(n, LANES), 1)
    rows = _round_up(rows, 8)               # sublane (8) granularity
    tb = min(row_tile, rows)
    # Keep >= 2 grid steps when possible so the "parallel" axis really splits
    # across v7x's 2 TensorCores (a grid of length 1 idles one TC).
    if rows // tb < 2 and rows >= 16:
        tb = max(8, ((rows // 2) // 8) * 8)
    rows = pl.cdiv(rows, tb) * tb           # grid divides evenly
    padded = rows * LANES

    if padded == n:
        # Fast path: no pad / no tail slice (each is a full extra HBM pass).
        t2d = flat.reshape(rows, LANES)
    else:
        t2d = jnp.pad(flat, (0, padded - n)).reshape(rows, LANES)

    itemsize = jnp.dtype(dtype).itemsize
    cost = pl.CostEstimate(
        flops=3 * K * padded,
        transcendentals=K * padded,
        bytes_accessed=2 * padded * itemsize,
    )

    out2d = pl.pallas_call(
        _mixexp_phi_kernel,
        out_shape=jax.ShapeDtypeStruct((rows, LANES), dtype),
        grid=(rows // tb,),
        in_specs=[
            pl.BlockSpec(memory_space=pltpu.MemorySpace.SMEM),   # w   [1, K]
            pl.BlockSpec(memory_space=pltpu.MemorySpace.SMEM),   # lam [1, K]
            pl.BlockSpec((tb, LANES), lambda i: (i, 0)),         # query tile
        ],
        out_specs=pl.BlockSpec((tb, LANES), lambda i: (i, 0)),
        compiler_params=pltpu.CompilerParams(
            dimension_semantics=("parallel",)),                  # v7x 2-TC sharding
        cost_estimate=cost,
    )(w, lam, t2d)

    if padded == n:
        return out2d.reshape(orig_shape)
    return out2d.reshape(-1)[:n].reshape(orig_shape)


def mixexp_phi_ref(t, mix, slope):
    """Pure-JAX reference (same math as the torch module, f32 accumulation)."""
    w = jax.nn.softmax(mix.astype(jnp.float32))
    lam = jnp.exp(slope.astype(jnp.float32))
    tf = t.astype(jnp.float32)[..., None]
    return jnp.sum(w * jnp.exp(-lam * tf), axis=-1)


if __name__ == "__main__":
    key = jax.random.PRNGKey(0)
    k1, k2, k3 = jax.random.split(key, 3)

    # Default parameters from the torch module:
    #   mix   = [log 0.2, log 0.8]  -> weights softmax(mix) = [0.2, 0.8]
    #   slope = log([10, 1e6])      -> rates exp(slope)     = [10, 1e6]
    mix = jnp.log(jnp.array([0.2, 0.8], jnp.float32))
    slope = jnp.log(jnp.array([10.0, 1.0e6], jnp.float32))

    # 1) Evenly-sized f32 query tensor -> exercises the no-pad fast path and
    #    a 2-step grid (both TCs on v7x get work).
    t = jax.random.uniform(k1, (2, 4, 16, 16), jnp.float32, minval=0.0, maxval=3.0)
    out = jax.block_until_ready(mixexp_phi(t, mix, slope))
    ref = mixexp_phi_ref(t, mix, slope)
    assert out.shape == t.shape and out.dtype == t.dtype
    assert jnp.allclose(out, ref, atol=1e-5, rtol=1e-5), (out, ref)
    # phi is a valid Archimedean generator: phi(t) in (0, 1] for t >= 0
    assert bool(jnp.all((out > 0.0) & (out <= 1.0)))

    # 2) Ragged size -> exercises the pad + slice path.
    t2 = jax.random.uniform(k2, (5, 37), jnp.float32, minval=0.0, maxval=2.0)
    out2 = jax.block_until_ready(mixexp_phi(t2, mix, slope))
    ref2 = mixexp_phi_ref(t2, mix, slope)
    assert out2.shape == t2.shape
    assert jnp.allclose(out2, ref2, atol=1e-5, rtol=1e-5), (out2, ref2)

    # 3) bf16 input -> narrow I/O path (compute stays f32 in-register),
    #    relaxed tolerance on the narrowed side only.
    t3 = jax.random.uniform(k3, (4, 8, 32), jnp.float32,
                            minval=0.0, maxval=2.0).astype(jnp.bfloat16)
    out3 = jax.block_until_ready(mixexp_phi(t3, mix, slope))
    ref3 = mixexp_phi_ref(t3, mix, slope)
    assert out3.shape == t3.shape and out3.dtype == jnp.bfloat16
    assert jnp.allclose(out3.astype(jnp.float32), ref3, atol=2e-2, rtol=2e-2)

    print("KERNEL_OK")
</pallas_src>

<mosaic_0001>
module attributes {stable_mosaic.version = 11 : i64} {
  func.func @_mixexp_phi_kernel(%arg0: i32, %arg1: memref<1x2xf32, #tpu.memory_space<smem>>, %arg2: memref<1x2xf32, #tpu.memory_space<smem>>, %arg3: memref<8x128xf32, #tpu.memory_space<vmem>>, %arg4: memref<8x128xf32, #tpu.memory_space<vmem>>) attributes {dimension_semantics = [#tpu.dimension_semantics<parallel>], iteration_bounds = array<i64: 2>, scalar_prefetch = 0 : i64, scratch_operands = 0 : i64, tpu.core_type = #tpu.core_type<tc>, window_params = [{transform_indices = @transform_0, window_bounds = array<i64: 1, 2>}, {transform_indices = @transform_1, window_bounds = array<i64: 1, 2>}, {transform_indices = @transform_2, window_bounds = array<i64: 8, 128>}, {transform_indices = @transform_3, window_bounds = array<i64: 8, 128>}]} {
    %c0 = arith.constant 0 : index
    %c0_0 = arith.constant 0 : index
    %0 = vector.load %arg3[%c0, %c0_0] : memref<8x128xf32, #tpu.memory_space<vmem>>, vector<8x128xf32>
    %c0_1 = arith.constant 0 : index
    %c0_2 = arith.constant 0 : index
    %1 = memref.load %arg1[%c0_1, %c0_2] : memref<1x2xf32, #tpu.memory_space<smem>>
    %c0_3 = arith.constant 0 : index
    %c0_4 = arith.constant 0 : index
    %2 = memref.load %arg2[%c0_3, %c0_4] : memref<1x2xf32, #tpu.memory_space<smem>>
    %cst = arith.constant 0.000000e+00 : f32
    %3 = arith.subf %cst, %2 : f32
    %4 = vector.broadcast %3 : f32 to vector<8x128xf32>
    %5 = arith.mulf %4, %0 : vector<8x128xf32>
    %6 = math.exp %5 : vector<8x128xf32>
    %7 = vector.broadcast %1 : f32 to vector<8x128xf32>
    %8 = arith.mulf %7, %6 : vector<8x128xf32>
    %c0_5 = arith.constant 0 : index
    %c1 = arith.constant 1 : index
    %9 = memref.load %arg1[%c0_5, %c1] : memref<1x2xf32, #tpu.memory_space<smem>>
    %c0_6 = arith.constant 0 : index
    %c1_7 = arith.constant 1 : index
    %10 = memref.load %arg2[%c0_6, %c1_7] : memref<1x2xf32, #tpu.memory_space<smem>>
    %cst_8 = arith.constant 0.000000e+00 : f32
    %11 = arith.subf %cst_8, %10 : f32
    %12 = vector.broadcast %11 : f32 to vector<8x128xf32>
    %13 = arith.mulf %12, %0 : vector<8x128xf32>
    %14 = math.exp %13 : vector<8x128xf32>
    %15 = vector.broadcast %9 : f32 to vector<8x128xf32>
    %16 = arith.mulf %15, %14 : vector<8x128xf32>
    %17 = arith.addf %8, %16 : vector<8x128xf32>
    %c0_9 = arith.constant 0 : index
    %c0_10 = arith.constant 0 : index
    %18 = vector.load %arg4[%c0_9, %c0_10] : memref<8x128xf32, #tpu.memory_space<vmem>>, vector<8x128xf32>
    tpu.vector_store %arg4[%c0_9, %c0_10], %17 {strides = array<i32>} : memref<8x128xf32, #tpu.memory_space<vmem>>, vector<8x128xf32>,
    return
  }
  func.func @transform_0(%arg0: i32) -> (i32, i32) {
    %c0_i32 = arith.constant 0 : i32
    %c0_i32_0 = arith.constant 0 : i32
    %c0_i32_1 = arith.constant 0 : i32
    return %c0_i32, %c0_i32_0 : i32, i32
  }
  func.func @transform_1(%arg0: i32) -> (i32, i32) {
    %c0_i32 = arith.constant 0 : i32
    %c0_i32_0 = arith.constant 0 : i32
    %c0_i32_1 = arith.constant 0 : i32
    return %c0_i32, %c0_i32_0 : i32, i32
  }
  func.func @transform_2(%arg0: i32) -> (i32, i32) {
    %c0_i32 = arith.constant 0 : i32
    %c0_i32_0 = arith.constant 0 : i32
    return %arg0, %c0_i32 : i32, i32
  }
  func.func @transform_3(%arg0: i32) -> (i32, i32) {
    %c0_i32 = arith.constant 0 : i32
    %c0_i32_0 = arith.constant 0 : i32
    return %arg0, %c0_i32 : i32, i32
  }
}

</mosaic_0001>

<bundles_post_ra>
// kernel: tpu_custom_call.1
= control target key start
LH: loop header
LB: loop body
LE: loop exit
PB: predicated region body
PF: predicated region fallthrough
CT: control target
= control target key end

     0   :  { %8 = vsyncpa [#allocation5], 0  ;;  %s736_s0 = inlined_call_operand.hbm [shape: f32[1,2], index: 0, kind: input, shape index: {}]   ;;  %s737_s1 = inlined_call_operand.hbm [shape: f32[1,2], index: 1, kind: input, shape index: {}]   ;;  %s738_s2 = inlined_call_operand.hbm [shape: f32[16,128], index: 2, kind: input, shape index: {}]   ;;  %s739_s3 = inlined_call_operand.hbm [shape: f32[16,128], index: 3, kind: output, shape index: {}]  }
   0x1   :  { %9 = vsyncpa [#allocation7], 0 }
   0x2   :  { %10 = vsyncpa [#allocation3], 0 }
   0x3   :  { %12 = vsyncpa [#allocation3 + $0x1], 0 }
   0x4   :  { %13 = vsyncpa [#allocation4], 0 }
   0x5   :  { %15 = vsyncpa [#allocation4 + $0x1], 0  ;;  %s591_s12 = smov 0   ;;  %s593_s13 = smov 0  }
   0x6   :  { %s595_s14 = smov 0   ;;  %s597_s15 = smov 0  }
   0x7 LB: > { %s612_s16 = sadd.s32 4294967295, %s567_s15   ;;  %s344_s17 = sadd.s32 4294967294, %s567_s15   ;;  %s567_s15 = sphi %s597_s15, %s749_s15   ;;  %s563_s14 = sphi %s595_s14, %s748_s14   ;;  %s559_s13 = sphi %s593_s13, %s747_s13   ;;  %s555_s12 = sphi %s591_s12, %s746_s12  }
   0x8   : > { %p83_p0 = scmp.ne.s32.totalorder %s559_s13, %s555_s12  ;;  %p84_p1 = scmp.eq.s32.totalorder %s612_s16, 0 }
   0x9   : > { %p107_p2 = scmp.eq.s32.totalorder %s612_s16, 1  ;;  %p113_p3 = scmp.eq.s32.totalorder %s344_s17, 1 }
   0xa   : > { %p621_p4 = por %p84_p1, %p83_p0  ;;  %p345_p5 = scmp.ge.s32.totalorder %s567_s15, 1 }
   0xb   : > { %p626_p6 = por %p113_p3, %p83_p0  ;;  %p120_p7 = scmp.lt.s32.totalorder %s567_s15, 3 }
   0xc   : > { %s132_s22 = sshll.u32 %s736_s0, 4  ;;  %s142_s26 = sshll.u32 %s737_s1, 4  ;;  %s133_s22 = int_to_ptr.hbm [resolvable:$true] %s132_s22  ;;  %s143_s26 = int_to_ptr.hbm [resolvable:$true] %s142_s26 }
   0xd   : > { %p634_p8 = pnand %p345_p5, %p120_p7  ;;  %s647_s27 = sadd.s32 1, %s567_s15  }
   0xe   : > { %s67_s28 = ssub.s32 %s567_s15, %s647_s27  ;;  %s569_s29 = smov [#allocation2]  }
   0xf   : > { %p374_p10 = pneg %p634_p8  ;;  %s570_s30 = smov [#allocation6]  }
  0x10   : > { %p68_p12 = scmp.eq.s32.totalorder %s67_s28, 0  ;;  %s70_s4 = sadd.s32 1, %s563_s14 }
  0x11   : > { %p375_p11 = pnand %p374_p10, %p84_p1  ;;  %p77_p13 = scmp.ne.s32.totalorder %s563_s14, %s559_s13 }
  0x12   : > { %p78_p0 = scmp.eq.s32.totalorder %s567_s15, 0  ;;  %p391_p7 = scmp.lt.s32.totalorder %s567_s15, 2 }
  0x13   : > { %377 = dma.hbm_to_smem (!%p375_p11), %s133_s22, 16, %s569_s29, [#allocation5]  }
  0x14   : > { %380 = dma.hbm_to_smem (!%p375_p11), %s143_s26, 16, %s570_s30, [#allocation7]  }
  0x15   : > { %s656_s5 = scalar_select %p68_p12, %s563_s14, %s70_s4  }
  0x16   : > { %p79_p3 = por %p78_p0, %p77_p13  ;;  %p660_p5 = por %p107_p2, %p77_p13 }
  0x17   : > { %s153_s7 = sand.u32 1, %s563_s14   ;;  %s350_s9 = sshll.u32 %s567_s15, 3 }
  0x18   : > { %s349_s8 = sshll.u32 %s153_s7, 3  ;;  %s161_s17 = scalar_lea.hbm %s738_s2, %s350_s9 }
  0x19   : > { %s157_s20 = scalar_lea.vmem [#allocation8], %s349_s8  ;;  %s163_s22 = sshll.u32 %s161_s17, 4  ;;  %s164_s22 = int_to_ptr.hbm [resolvable:$true] %s163_s22 }
  0x1a   : > { %s165_s21 = sshll.u32 %s157_s20, 4  ;;  %p670_p10 = pnand %p391_p7, %p79_p3  ;;  %s166_s21 = int_to_ptr.vmem [resolvable:$true] %s165_s21 }
  0x1b   : > { %s154_s25 = scalar_lea.sflag [#allocation3], %s153_s7  ;;  %s463_s26 = sshra.s32 %s164_s22, 4  ;;  %s464_s26 = int_to_ptr.hbm [resolvable:$true] %s463_s26 }
  0x1c   : > { %s465_s28 = scalar_lea.hbm %s464_s26, 8  ;;  %p467_p11 = pneg %p670_p10 }
  0x1d   : > { %p466_p2 = scmp.ne.s32.totalorder %s464_s26, %s465_s28  ;;  %s470_s4 = scalar_lea.hbm %s738_s2, 16 }
  0x1e   : > { %p471_p0 = scmp.lt.s32.totalorder %s464_s26, %s738_s2  ;;  %p472_p3 = scmp.lt.s32.totalorder %s470_s4, %s465_s28 }
  0x1f   : > { %p468_p12 = pnand %p467_p11, %p466_p2 }
  0x20   : > { %p473_p7 = por %p472_p3, %p471_p0 }
  0x21   : > { %p469_p13 = pneg %p468_p12 }
  0x23   : > { %p474_p9 = pnand %p473_p7, %p469_p13 }
  0x25   : > { %477 = shalt.err (!%p474_p9)
}
  0x26   : > { %384 = dma.hbm_to_vmem [thread:$0]  (!%p670_p10), %s164_s22, 128, %s166_s21, %s154_s25  }
  0x27   : > { %174 = sbr.rel (%p634_p8) target bundleno = 81 (0x51), region = 32 }
  0x2c   : > { %538 = dma.done.wait (%p84_p1), [#allocation5], 16  }
  0x2d   : > { %540 = vsyncadd (%p84_p1), [#allocation5], 4294967280 }
  0x2e   : > { %542 = dma.done.wait (%p84_p1), [#allocation7], 16  }
  0x2f   : > { %544 = vsyncadd (%p84_p1), [#allocation7], 4294967280  ;;  %s695_s7 = sand.u32 1, %s559_s13  }
  0x30   : > { %s354_s23 = sshll.u32 %s695_s7, 3  ;;  %s187_s10 = scalar_lea.sflag [#allocation3], %s695_s7 }
  0x31   : > { %s190_s11 = scalar_lea.vmem [#allocation8], %s354_s23 }
  0x32   : > { %546 = dma.done.wait (%p621_p4), %s187_s10, 128  }
  0x33   : > { %548 = vsyncadd (%p621_p4), %s187_s10, 4294967168 }
  0x34   : > { %196 = sfence }
  0x35   : > { %s217_s17 = sld [smem:[#allocation6]]  ;;  %v215_v0 = vld [vmem:[%s190_s11] sm:$0xff]  ;;  %s359_s18 = sshll.u32 %s612_s16, 3 }
  0x36   : > { %s357_s20 = sld [smem:[#allocation6 + $0x1]]  ;;  %s247_s29 = scalar_lea.hbm %s739_s3, %s359_s18 }
  0x37   : > { %s216_s24 = sld [smem:[#allocation2]]  ;;  %s214_s30 = scalar_lea.vmem [#allocation9], %s354_s23 }
  0x38   : > { %s356_s25 = sld [smem:[#allocation2 + $0x1]]  ;;  %s249_s4 = sshll.u32 %s214_s30, 4  ;;  %s250_s4 = int_to_ptr.vmem [resolvable:$true] %s249_s4 }
  0x39   : > { %s251_s8 = sshll.u32 %s247_s29, 4  ;;  %s237_s9 = scalar_lea.sflag [#allocation4], %s695_s7  ;;  %s252_s8 = int_to_ptr.hbm [resolvable:$true] %s251_s8 }
  0x3a   : > { %s507_s16 = sshra.s32 %s252_s8, 4  ;;  %s513_s23 = scalar_lea.hbm %s739_s3, 16  ;;  %s508_s16 = int_to_ptr.hbm [resolvable:$true] %s507_s16 }
  0x3b   : > { %s218_s21 = ssub.f32 0.0, %s217_s17  ;;  %s509_s10 = scalar_lea.hbm %s508_s16, 8 }
  0x3c   : > { %s227_s22 = ssub.f32 0.0, %s357_s20  ;;  %p510_p1 = scmp.ne.s32.totalorder %s508_s16, %s509_s10 }
  0x3d   : > { %v219_v1 = vstv %s218_s21  ;;  %v223_v7 = vstv %s216_s24  ;;  %p514_p9 = scmp.lt.s32.totalorder %s508_s16, %s739_s3  ;;  %p515_p10 = scmp.lt.s32.totalorder %s513_s23, %s509_s10 }
  0x3e   : > { %v220_v2 = vmul.f32 %v219_v1, %v215_v0  ;;  %v228_v3 = vstv %s227_s22  ;;  %v232_v9 = vstv %s356_s25  ;;  %p511_p4 = pnand %p510_p1, %p660_p5 }
  0x3f   : > { %v229_v5 = vmul.f32 %v228_v3, %v215_v0  ;;  %p516_p2 = por %p515_p10, %p514_p9 }
  0x40   : > { %v221_v4 = vmul.f32 1.442695, %v220_v2  ;;  %p512_p8 = pneg %p511_p4 }
  0x41   : > { %v230_v6 = vmul.f32 1.442695, %v229_v5 }
  0x42   : > { %429 = vpow2.f32 %v221_v4  ;;  %p517_p11 = pnand %p516_p2, %p512_p8 }
  0x43   : > { %431 = vpow2.f32 %v230_v6 }
  0x48   : > { %v430_v8 = vpop.eup %429 }
  0x49   : > { %v224_v10 = vmul.f32 %v430_v8, %v223_v7  ;;  %v432_v11 = vpop.eup %431 }
  0x4a   : > { %v233_v12 = vmul.f32 %v432_v11, %v232_v9 }
  0x4c   : > { %v234_v13 = vadd.f32 %v233_v12, %v224_v10 }
  0x4e   : > { %235 = vst [vmem:[%s214_s30] sm:$0xff] %v234_v13 }
  0x4f   : > { %520 = shalt.err (!%p517_p11)
}
  0x50   : > { %372 = dma.vmem_to_hbm [thread:$0]  (%p660_p5), %s250_s4, 128, %s252_s8, %s237_s9  }
  0x51 PF: > { %s263_s7 = sand.u32 1, %s555_s12   ;;  %p745_p12 = scmp.ge.s32.totalorder %s567_s15, 2 }
  0x52   : > { %s264_s22 = scalar_lea.sflag [#allocation4], %s263_s7 }
  0x53   : > { %p386_p13 = pnand %p745_p12, %p626_p6 }
  0x55   : > { %p387_p0 = pneg %p386_p13 }
  0x57   : > { %550 = dma.done.wait (%p387_p0), %s264_s22, 128  }
  0x58   : > { %552 = vsyncadd (%p387_p0), %s264_s22, 4294967168  ;;  %p18_p3 = scmp.ge.s32.totalorder %s647_s27, 4   ;;  %s746_s12 = smov %s559_s13 }
  0x59   : > { %s747_s13 = smov %s563_s14  ;;  %s748_s14 = smov %s656_s5 }
  0x5a   : > { %s749_s15 = smov %s647_s27  ;;  %20 = sbr.rel (!%p18_p3) target bundleno = 7 (0x7), region = 86 }
  0x5f   :  { %270 = vsyncpa [#allocation3], 1 }
  0x60   :  { %272 = vsyncpa [#allocation3 + $0x1], 1 }
  0x61   :  { %273 = vsyncpa [#allocation4], 1 }
  0x62   :  { %275 = vsyncpa [#allocation4 + $0x1], 1 }
  0x63   :  { %276 = vsyncpa [#allocation5], 1 }
  0x64   :  { %278 = vsyncpa [#allocation5 + $0x1], 1 }
  0x65   :  { %279 = vsyncpa [#allocation7], 1 }

</bundles_post_ra>
